<compile_context>
chip_gen: v6e
topology: v6e:2x2x1
jax: 0.10.0
libtpu: 0.0.40
codegen_flags: <defaults>
</compile_context>

<pallas_src>
import math

import jax
import jax.numpy as jnp
from jax.experimental import pallas as pl
from jax.experimental.pallas import tpu as pltpu

EPS = 1e-5                       # nn.LayerNorm default
_VMEM_FALLBACK = 48 * 1024 * 1024
_vmem_cache = None


def _vmem_limit():
    """~75% of physical VMEM (48 MiB on v7x, 96 MiB on v5e/v6e)."""
    global _vmem_cache
    if _vmem_cache is None:
        try:
            cap = int(pltpu.get_tpu_info().vmem_capacity_bytes)
            _vmem_cache = max(32 * 1024 * 1024,
                              min(int(cap * 0.75), 100 * 1024 * 1024))
        except Exception:
            _vmem_cache = _VMEM_FALLBACK
    return _vmem_cache


def _round_up(x, m):
    return ((x + m - 1) // m) * m


def _layernorm(x, w, b):
    mu = jnp.mean(x, axis=-1, keepdims=True)
    var = jnp.mean((x - mu) * (x - mu), axis=-1, keepdims=True)
    return (x - mu) * jax.lax.rsqrt(var + EPS) * w + b


def _gelu_exact(x):
    return 0.5 * x * (1.0 + jax.lax.erf(x * 0.7071067811865476))


# ---------------------------------------------------------------------------
# Tiled fused linear kernel:  Y = X @ W + b   (bf16 matmul, f32 accumulate)
# Used for the patch-embedding conv (as im2col matmul) and the classifier.
# The output N dim is padded to a lane-dense multiple of 128.
# ---------------------------------------------------------------------------
def _linear_kernel(x_ref, w_ref, b_ref, o_ref):
    o_ref[...] = (
        jnp.dot(x_ref[...], w_ref[...], preferred_element_type=jnp.float32)
        + b_ref[...]
    )


def pallas_linear(x, w, b, *, tile_m=512):
    """x: (M, K), w: (K, N), b: (1, N).  Returns (M, N) f32."""
    M, K = x.shape
    N = w.shape[1]
    Np = _round_up(max(N, 128), 128)          # lane-dense output stores
    if Np != N:
        w = jnp.pad(w, ((0, 0), (0, Np - N)))
        b = jnp.pad(b, ((0, 0), (0, Np - N)))
    TM = min(tile_m, _round_up(M, 8))
    Mp = _round_up(M, TM)
    if Mp != M:
        x = jnp.pad(x, ((0, Mp - M), (0, 0)))
    out = pl.pallas_call(
        _linear_kernel,
        out_shape=jax.ShapeDtypeStruct((Mp, Np), jnp.float32),
        grid=(Mp // TM,),
        in_specs=[
            pl.BlockSpec((TM, K), lambda i: (i, 0)),
            pl.BlockSpec((K, Np), lambda i: (0, 0)),
            pl.BlockSpec((1, Np), lambda i: (0, 0)),
        ],
        out_specs=pl.BlockSpec((TM, Np), lambda i: (i, 0)),
        compiler_params=pltpu.CompilerParams(
            dimension_semantics=("parallel",),
            vmem_limit_bytes=_vmem_limit()),
    )(x.astype(jnp.bfloat16), w.astype(jnp.bfloat16), b.astype(jnp.float32))
    return out[:M, :N]


# ---------------------------------------------------------------------------
# Fused depth-stacked ViT encoder kernel (pre-LN):
#   h   = x + Proj(MHSA(LN1(x)))
#   out = h + MLP(LN2(h))             MLP = Linear -> GELU(erf) -> Linear
# grid = (batch, depth); depth innermost ("arbitrary").  The (S,E) activation
# is carried across depth in a VMEM scratch; per-block weights are indexed by
# the depth coordinate.  Only the last block writes the attention output.
# ---------------------------------------------------------------------------
def _make_vit_stack_kernel(num_heads, emb_dim, s_real, s_pad, depth):
    head_dim = emb_dim // num_heads
    scale = 1.0 / math.sqrt(head_dim)

    def kernel(x_ref, ln1w_ref, ln1b_ref, wqkv_ref, bqkv_ref, pw_ref, pb_ref,
               ln2w_ref, ln2b_ref, w1_ref, b1_ref, w2_ref, b2_ref,
               out_ref, attn_ref, carry_ref):
        d = pl.program_id(1)

        @pl.when(d == 0)
        def _():
            carry_ref[...] = x_ref[0]

        x = carry_ref[...]                                        # (S, E) f32

        # ---- LN1 + fused QKV projection: (S, E) @ (E, 3E) ----
        xn = _layernorm(x, ln1w_ref[0], ln1b_ref[0])
        qkv = jnp.dot(xn.astype(jnp.bfloat16), wqkv_ref[0],
                      preferred_element_type=jnp.float32) + bqkv_ref[0]
        qkv_b16 = qkv.astype(jnp.bfloat16)                        # (S, 3E)

        # ---- split heads: lane slices stacked on a leading head axis ----
        def heads(off):
            return jnp.stack(
                [qkv_b16[:, off + h * head_dim: off + (h + 1) * head_dim]
                 for h in range(num_heads)], axis=0)              # (H, S, hd)
        q = heads(0)
        k = heads(emb_dim)
        v = heads(2 * emb_dim)

        # ---- scores (batched over heads): 'hsd,htd->hst' ----
        s = jax.lax.dot_general(
            q, k, (((2,), (2,)), ((0,), (0,))),
            preferred_element_type=jnp.float32) * scale           # (H, S, S)
        if s_pad > s_real:                    # mask padded key columns (f32)
            col = jax.lax.broadcasted_iota(jnp.int32, s.shape, 2)
            s = jnp.where(col < s_real, s, -1e30)

        # ---- softmax in f32 ----
        s = s - jnp.max(s, axis=-1, keepdims=True)
        e = jnp.exp(s)
        denom = jnp.sum(e, axis=-1, keepdims=True)
        p = e * pl.reciprocal(denom, approx=True)     # internal (PV) use only

        @pl.when(d == depth - 1)
        def _():
            attn_ref[0] = e / denom           # exact normalization on emit

        # ---- PV 'hst,htd->hsd', concat heads, output proj (S,E)@(E,E) ----
        ao = jax.lax.dot_general(
            p.astype(jnp.bfloat16), v, (((2,), (1,)), ((0,), (0,))),
            preferred_element_type=jnp.float32)                   # (H, S, hd)
        ao_cat = jnp.concatenate(
            [ao[h] for h in range(num_heads)], axis=-1)           # (S, E)
        proj = jnp.dot(ao_cat.astype(jnp.bfloat16), pw_ref[0],
                       preferred_element_type=jnp.float32) + pb_ref[0]
        h1 = x + proj                                             # residual 1

        # ---- LN2 + MLP ----
        hn = _layernorm(h1, ln2w_ref[0], ln2b_ref[0])
        m = jnp.dot(hn.astype(jnp.bfloat16), w1_ref[0],
                    preferred_element_type=jnp.float32) + b1_ref[0]
        m = _gelu_exact(m)
        m = jnp.dot(m.astype(jnp.bfloat16), w2_ref[0],
                    preferred_element_type=jnp.float32) + b2_ref[0]
        out = h1 + m                                              # residual 2

        carry_ref[...] = out

        @pl.when(d == depth - 1)
        def _():
            out_ref[0] = out

    return kernel


def _stack_blocks(blocks):
    """Stack per-block weights along a leading depth axis (matmul w in bf16)."""
    def st(key, cast=None):
        arr = jnp.stack([b[key] for b in blocks], axis=0)
        return arr.astype(cast) if cast is not None else arr
    return dict(
        ln1_w=st("ln1_w"), ln1_b=st("ln1_b"),
        qkv_w=st("qkv_w", jnp.bfloat16), qkv_b=st("qkv_b"),
        proj_w=st("proj_w", jnp.bfloat16), proj_b=st("proj_b"),
        ln2_w=st("ln2_w"), ln2_b=st("ln2_b"),
        w1=st("w1", jnp.bfloat16), b1=st("b1"),
        w2=st("w2", jnp.bfloat16), b2=st("b2"),
    )


def vit_blocks_fused(x, w, num_heads, s_real, depth):
    """x: (N, S_pad, E) f32.  Returns (out (N,S_pad,E), attn (N,H,S_pad,S_pad))."""
    N, S, E = x.shape
    Hm = w["w1"].shape[2]
    kernel = _make_vit_stack_kernel(num_heads, E, s_real, S, depth)

    def wspec(shape):          # weight spec indexed by the depth coordinate
        nd = len(shape)
        return pl.BlockSpec(shape, lambda b, d, _nd=nd: (d,) + (0,) * (_nd - 1))

    in_specs = [
        pl.BlockSpec((1, S, E), lambda b, d: (b, 0, 0)),          # x
        wspec((1, 1, E)), wspec((1, 1, E)),                       # ln1 w, b
        wspec((1, E, 3 * E)), wspec((1, 1, 3 * E)),               # qkv w, b
        wspec((1, E, E)), wspec((1, 1, E)),                       # proj w, b
        wspec((1, 1, E)), wspec((1, 1, E)),                       # ln2 w, b
        wspec((1, E, Hm)), wspec((1, 1, Hm)),                     # mlp w1, b1
        wspec((1, Hm, E)), wspec((1, 1, E)),                      # mlp w2, b2
    ]
    out_shape = (jax.ShapeDtypeStruct((N, S, E), jnp.float32),
                 jax.ShapeDtypeStruct((N, num_heads, S, S), jnp.float32))
    out_specs = (pl.BlockSpec((1, S, E), lambda b, d: (b, 0, 0)),
                 pl.BlockSpec((1, num_heads, S, S), lambda b, d: (b, 0, 0, 0)))

    return pl.pallas_call(
        kernel,
        out_shape=out_shape,
        grid=(N, depth),
        in_specs=in_specs,
        out_specs=out_specs,
        scratch_shapes=[pltpu.VMEM((S, E), jnp.float32)],
        compiler_params=pltpu.CompilerParams(
            dimension_semantics=("parallel", "arbitrary"),
            vmem_limit_bytes=_vmem_limit()),
    )(x, w["ln1_w"], w["ln1_b"], w["qkv_w"], w["qkv_b"],
      w["proj_w"], w["proj_b"], w["ln2_w"], w["ln2_b"],
      w["w1"], w["b1"], w["w2"], w["b2"])


# ---------------------------------------------------------------------------
# Parameter init (deterministic, synthetic) and full forward pass
# ---------------------------------------------------------------------------
def init_vit_params(key, in_channels, img_size, emb_dim, num_heads,
                    patch_size, depth, mlp_ratio, num_classes):
    num_patches = (img_size // patch_size) ** 2
    hidden = mlp_ratio * emb_dim
    ks = jax.random.split(key, 8 + depth)
    std = 0.02

    def nrm(k, shape, s=std):
        return (s * jax.random.normal(k, shape)).astype(jnp.float32)

    params = {
        "patch_w": nrm(ks[0], (in_channels * patch_size * patch_size, emb_dim)),
        "patch_b": jnp.zeros((1, emb_dim), jnp.float32),
        "pos_emb": nrm(ks[1], (1, num_patches + 1, emb_dim), 1.0),
        "cls_token": nrm(ks[2], (1, 1, emb_dim), 1.0),
        "cls_w": nrm(ks[3], (emb_dim, num_classes)),
        "cls_b": jnp.zeros((1, num_classes), jnp.float32),
        "blocks": [],
    }
    for d in range(depth):
        bk = jax.random.split(ks[8 + d], 4)
        params["blocks"].append({
            "ln1_w": jnp.ones((1, emb_dim), jnp.float32),
            "ln1_b": jnp.zeros((1, emb_dim), jnp.float32),
            "qkv_w": nrm(bk[0], (emb_dim, 3 * emb_dim)),
            "qkv_b": jnp.zeros((1, 3 * emb_dim), jnp.float32),
            "proj_w": nrm(bk[1], (emb_dim, emb_dim)),
            "proj_b": jnp.zeros((1, emb_dim), jnp.float32),
            "ln2_w": jnp.ones((1, emb_dim), jnp.float32),
            "ln2_b": jnp.zeros((1, emb_dim), jnp.float32),
            "w1": nrm(bk[2], (emb_dim, hidden)),
            "b1": jnp.zeros((1, hidden), jnp.float32),
            "w2": nrm(bk[3], (hidden, emb_dim)),
            "b2": jnp.zeros((1, emb_dim), jnp.float32),
        })
    return params


def vit_forward(params, x, *, patch_size, num_heads):
    """x: (N, C, H, W) f32.  Returns (scores (N, classes), attn (N,H,S,S))."""
    N, C, H, W = x.shape
    p = patch_size
    Hp, Wp = H // p, W // p
    E = params["patch_w"].shape[1]

    # ---- patch embedding: Conv2d(k=p, stride=p) == im2col + matmul ----
    patches = (x.reshape(N, C, Hp, p, Wp, p)
                 .transpose(0, 2, 4, 1, 3, 5)
                 .reshape(N * Hp * Wp, C * p * p))
    emb = pallas_linear(patches, params["patch_w"], params["patch_b"])
    emb = emb.reshape(N, Hp * Wp, E)

    # ---- prepend CLS token, add positional embedding (glue) ----
    cls = jnp.broadcast_to(params["cls_token"], (N, 1, E))
    tok = jnp.concatenate([cls, emb], axis=1) + params["pos_emb"]

    # ---- pad sequence to a lane-dense multiple of 128; masked in-kernel ----
    s_real = tok.shape[1]
    s_pad = _round_up(max(s_real, 128), 128)
    if s_pad != s_real:
        tok = jnp.pad(tok, ((0, 0), (0, s_pad - s_real), (0, 0)))

    # ---- all transformer blocks in a single fused pallas_call ----
    depth = len(params["blocks"])
    stacked = _stack_blocks(params["blocks"])
    tok_out, attention = vit_blocks_fused(tok, stacked, num_heads, s_real,
                                          depth)
    attention = attention[:, :, :s_real, :s_real]

    # ---- classifier on CLS token (lane-dense padding inside pallas_linear) --
    scores = pallas_linear(tok_out[:, 0, :], params["cls_w"], params["cls_b"])
    return scores, attention


# ---------------------------------------------------------------------------
# Pure-JAX f32 reference (mirrors the PyTorch module) for validation
# ---------------------------------------------------------------------------
def vit_reference(params, x, *, patch_size, num_heads):
    N, C, H, W = x.shape
    p = patch_size
    Hp, Wp = H // p, W // p
    E = params["patch_w"].shape[1]
    hd = E // num_heads

    patches = (x.reshape(N, C, Hp, p, Wp, p)
                 .transpose(0, 2, 4, 1, 3, 5)
                 .reshape(N * Hp * Wp, C * p * p))
    emb = (patches @ params["patch_w"] + params["patch_b"]).reshape(N, Hp * Wp, E)
    cls = jnp.broadcast_to(params["cls_token"], (N, 1, E))
    tok = jnp.concatenate([cls, emb], axis=1) + params["pos_emb"]

    attn = None
    for blk in params["blocks"]:
        xn = _layernorm(tok, blk["ln1_w"][0], blk["ln1_b"][0])
        qkv = xn @ blk["qkv_w"] + blk["qkv_b"][0]
        q, k, v = qkv[..., :E], qkv[..., E:2 * E], qkv[..., 2 * E:]

        def split(t):
            return t.reshape(N, -1, num_heads, hd).transpose(0, 2, 1, 3)

        qh, kh, vh = split(q), split(k), split(v)
        s = jnp.einsum("nhsd,nhtd->nhst", qh, kh) / math.sqrt(hd)
        pr = jax.nn.softmax(s, axis=-1)
        ao = jnp.einsum("nhst,nhtd->nhsd", pr, vh)
        ao = ao.transpose(0, 2, 1, 3).reshape(N, -1, E)
        h1 = tok + ao @ blk["proj_w"] + blk["proj_b"][0]
        hn = _layernorm(h1, blk["ln2_w"][0], blk["ln2_b"][0])
        m = hn @ blk["w1"] + blk["b1"][0]
        m = _gelu_exact(m)
        m = m @ blk["w2"] + blk["b2"][0]
        tok = h1 + m
        attn = pr
    scores = tok[:, 0] @ params["cls_w"] + params["cls_b"]
    return scores, attn


if __name__ == "__main__":
    batch, in_channels, img_size = 2, 4, 16
    emb_dim, num_heads, patch_size = 32, 4, 4
    depth, mlp_ratio, num_classes = 2, 2, 10

    key = jax.random.PRNGKey(0)
    kp, kx = jax.random.split(key)
    params = init_vit_params(kp, in_channels, img_size, emb_dim, num_heads,
                             patch_size, depth, mlp_ratio, num_classes)
    x = jax.random.normal(kx, (batch, in_channels, img_size, img_size),
                          dtype=jnp.float32)

    scores, attention = vit_forward(params, x, patch_size=patch_size,
                                    num_heads=num_heads)
    scores = jax.block_until_ready(scores)
    attention = jax.block_until_ready(attention)

    num_patches = (img_size // patch_size) ** 2
    assert scores.shape == (batch, num_classes)
    assert attention.shape == (batch, num_heads, num_patches + 1,
                               num_patches + 1)
    assert bool(jnp.all(jnp.isfinite(scores)))
    # emitted attention rows are exactly normalized
    assert bool(jnp.allclose(attention.sum(-1), 1.0, atol=1e-3))

    # compare against f32 pure-JAX reference (bf16 matmuls -> loose tolerance)
    ref_scores, ref_attn = vit_reference(params, x, patch_size=patch_size,
                                         num_heads=num_heads)
    assert bool(jnp.allclose(scores, ref_scores, atol=2e-2, rtol=2e-2))
    assert bool(jnp.allclose(attention, ref_attn, atol=1e-2, rtol=1e-2))
    print("KERNEL_OK")
</pallas_src>

<mosaic_0001>
module attributes {stable_mosaic.version = 11 : i64} {
  func.func @_linear_kernel(%arg0: i32, %arg1: memref<32x64xbf16, #tpu.memory_space<vmem>>, %arg2: memref<64x128xbf16, #tpu.memory_space<vmem>>, %arg3: memref<1x128xf32, #tpu.memory_space<vmem>>, %arg4: memref<32x128xf32, #tpu.memory_space<vmem>>) attributes {dimension_semantics = [#tpu.dimension_semantics<parallel>], iteration_bounds = array<i64: 1>, scalar_prefetch = 0 : i64, scratch_operands = 0 : i64, tpu.core_type = #tpu.core_type<tc>, window_params = [{transform_indices = @transform_0, window_bounds = array<i64: 32, 64>}, {pipeline_mode = #tpu.pipeline_mode<synchronous>, transform_indices = @transform_1, window_bounds = array<i64: 64, 128>}, {pipeline_mode = #tpu.pipeline_mode<synchronous>, transform_indices = @transform_2, window_bounds = array<i64: 1, 128>}, {transform_indices = @transform_3, window_bounds = array<i64: 32, 128>}]} {
    %c0 = arith.constant 0 : index
    %c0_0 = arith.constant 0 : index
    %0 = vector.load %arg1[%c0, %c0_0] : memref<32x64xbf16, #tpu.memory_space<vmem>>, vector<32x64xbf16>
    %c0_1 = arith.constant 0 : index
    %c0_2 = arith.constant 0 : index
    %1 = vector.load %arg2[%c0_1, %c0_2] : memref<64x128xbf16, #tpu.memory_space<vmem>>, vector<64x128xbf16>
    %cst = arith.constant dense<0.000000e+00> : vector<32x128xf32>
    %2 = tpu.matmul %0, %1, %cst {dimension_numbers = #tpu.dot_dimension_numbers<[1], [0], [0], [1], [0, 0, 1, 1], [], []>} : vector<32x64xbf16>, vector<64x128xbf16>, vector<32x128xf32> -> vector<32x128xf32>
    %c0_3 = arith.constant 0 : index
    %c0_4 = arith.constant 0 : index
    %3 = vector.load %arg3[%c0_3, %c0_4] : memref<1x128xf32, #tpu.memory_space<vmem>>, vector<1x128xf32>
    %4 = vector.broadcast %3 : vector<1x128xf32> to vector<32x128xf32>
    %5 = arith.addf %2, %4 : vector<32x128xf32>
    %c0_5 = arith.constant 0 : index
    %c0_6 = arith.constant 0 : index
    %6 = vector.load %arg4[%c0_5, %c0_6] : memref<32x128xf32, #tpu.memory_space<vmem>>, vector<32x128xf32>
    tpu.vector_store %arg4[%c0_5, %c0_6], %5 {strides = array<i32>} : memref<32x128xf32, #tpu.memory_space<vmem>>, vector<32x128xf32>,
    return
  }
  func.func @transform_0(%arg0: i32) -> (i32, i32) {
    %c0_i32 = arith.constant 0 : i32
    %c0_i32_0 = arith.constant 0 : i32
    return %arg0, %c0_i32 : i32, i32
  }
  func.func @transform_1(%arg0: i32) -> (i32, i32) {
    %c0_i32 = arith.constant 0 : i32
    %c0_i32_0 = arith.constant 0 : i32
    %c0_i32_1 = arith.constant 0 : i32
    return %c0_i32, %c0_i32_0 : i32, i32
  }
  func.func @transform_2(%arg0: i32) -> (i32, i32) {
    %c0_i32 = arith.constant 0 : i32
    %c0_i32_0 = arith.constant 0 : i32
    %c0_i32_1 = arith.constant 0 : i32
    return %c0_i32, %c0_i32_0 : i32, i32
  }
  func.func @transform_3(%arg0: i32) -> (i32, i32) {
    %c0_i32 = arith.constant 0 : i32
    %c0_i32_0 = arith.constant 0 : i32
    return %arg0, %c0_i32 : i32, i32
  }
}

</mosaic_0001>

<bundles_post_ra>
// kernel: tpu_custom_call.1
= control target key start
LH: loop header
LB: loop body
LE: loop exit
PB: predicated region body
PF: predicated region fallthrough
CT: control target
= control target key end

     0   :  { %8 = vsyncpa [#allocation3], 0  ;;  %s320_s0 = inlined_call_operand.hbm [shape: bf16[32,64], index: 0, kind: input, shape index: {}]   ;;  %s321_s1 = inlined_call_operand.hbm [shape: bf16[64,128], index: 1, kind: input, shape index: {}]   ;;  %s322_s2 = inlined_call_operand.vmem [shape: f32[1,128], index: 2, kind: input, shape index: {}]   ;;  %s323_s3 = inlined_call_operand.hbm [shape: f32[32,128], index: 3, kind: output, shape index: {}]  }
   0x1   :  { %9 = vsyncpa [#allocation6], 0 }
   0x2   :  { %10 = vsyncpa [#allocation4], 0  ;;  %s281_s12 = smov [#allocation2]  }
   0x3   :  { %s16_s13 = sshll.u32 %s281_s12, 4  ;;  %s17_s13 = int_to_ptr.vmem [resolvable:$true] %s16_s13 }
   0x4   :  { %s223_s14 = scalar_lea.vmem %s17_s13, 256  ;;  %p228_p1 = scmp.lt.s32.totalorder %s17_s13, %s17_s13 }
   0x5   :  { %p224_p0 = scmp.ne.s32.totalorder %s17_s13, %s223_s14  ;;  %p229_p2 = scmp.lt.s32.totalorder %s223_s14, %s223_s14 }
   0x7   :  { %p230_p3 = por %p229_p2, %p228_p1 }
   0x9   :  { %p231_p4 = pnand %p230_p3, %p224_p0 }
   0xb   :  { %234 = shalt.err (!%p231_p4)
}
   0xc   :  { %s282_s15 = smov 64   ;;  %s283_s16 = smov 4  }
   0xd   :  { %22 = dma.hbm_to_vmem [thread:$0]  %s320_s0, 256, %s17_s13, [#allocation3], %s282_s15, %s282_s15, %s283_s16  }
   0xe   :  { %s284_s19 = smov [#allocation5]  }
   0xf   :  { %s28_s20 = sshll.u32 %s284_s19, 4  ;;  %s29_s20 = int_to_ptr.vmem [resolvable:$true] %s28_s20 }
  0x10   :  { %s243_s21 = scalar_lea.vmem %s29_s20, 512  ;;  %p248_p6 = scmp.lt.s32.totalorder %s29_s20, %s29_s20 }
  0x11   :  { %p244_p5 = scmp.ne.s32.totalorder %s29_s20, %s243_s21  ;;  %p249_p7 = scmp.lt.s32.totalorder %s243_s21, %s243_s21 }
  0x13   :  { %p250_p8 = por %p249_p7, %p248_p6 }
  0x15   :  { %p251_p9 = pnand %p250_p8, %p244_p5 }
  0x17   :  { %254 = shalt.err (!%p251_p9)
}
  0x18   :  { %34 = dma.hbm_to_vmem [thread:$0]  %s321_s1, 512, %s29_s20, [#allocation6], %s282_s15, %s282_s15, %s283_s16  }
  0x19   :  { %275 = dma.done.wait [#allocation3], 256  }
  0x1a   :  { %276 = vsyncadd [#allocation3], 4294967040 }
  0x1b   :  { %277 = dma.done.wait [#allocation6], 512  }
  0x1c   :  { %278 = vsyncadd [#allocation6], 4294966784  ;;  %v209_v0 = vld [vmem:[#allocation5 + $0x18] sm:$0xff]   ;;  %v210_v1 = vld [vmem:[#allocation5 + $0x10] sm:$0xff]   ;;  %vm97_vm0 = vcmask 523264   ;;  %s285_s24 = smov [#allocation7]  }
  0x1d   :  { %190 = vmatprep.subr.bf16.mxu0 %v209_v0  ;;  %v211_v2 = vld [vmem:[#allocation5 + $0x8] sm:$0xff]   ;;  %v213_v3 = vld [vmem:[#allocation2] sm:$0xff]   ;;  %v212_v4 = vld [vmem:[#allocation5] sm:$0xff]   ;;  %s162_s25 = sshll.u32 %s285_s24, 4  ;;  %s163_s25 = int_to_ptr.vmem [resolvable:$true] %s162_s25 }
  0x1e   :  { %191 = vmatpush3.bf16.msra.mxu0 %v209_v0  ;;  %198 = vmatprep.mubr.msk.bf16.mxu0 %vm97_vm0, %v213_v3  ;;  %v214_v5 = vld [vmem:[#allocation2 + $0x8] sm:$0xff]   ;;  %v175_v6 = vld [vmem:[%s322_s2] ss:$0 sm:$0xff]  ;;  %s255_s26 = scalar_lea.vmem %s163_s25, 512  ;;  %p260_p11 = scmp.lt.s32.totalorder %s163_s25, %s163_s25 }
  0x1f   :  { %192 = vmatprep.subr.bf16.mxu0 %v210_v1  ;;  %p256_p10 = scmp.ne.s32.totalorder %s163_s25, %s255_s26  ;;  %p261_p12 = scmp.lt.s32.totalorder %s255_s26, %s255_s26 }
  0x21   :  { %p262_p13 = por %p261_p12, %p260_p11 }
  0x22   :  { %193 = vmatpush3.bf16.msra.mxu0 %v210_v1 }
  0x23   :  { %194 = vmatprep.subr.bf16.mxu0 %v211_v2  ;;  %p263_p0 = pnand %p262_p13, %p256_p10 }
  0x26   :  { %195 = vmatpush3.bf16.msra.mxu0 %v211_v2 }
  0x27   :  { %196 = vmatprep.subr.bf16.mxu0 %v212_v4 }
  0x2a   :  { %197 = vmatpush3.bf16.msra.mxu0 %v212_v4 }
  0x2d   :  { %199 = vmatmul.mubr.msk.bf16.vlgmr.msra.gmra.mxu0 %vm97_vm0, %v214_v5 }
  0xed   :  { %v200_v7 = vpop.f32.mrf.mxu0 }
  0xee   :  { %v147_v8 = vadd.f32 %v200_v7, %v175_v6 }
  0xef   :  { %v138_v9 = vpop.f32.mrf.mxu0 }
  0xf0   :  { %155 = vst [vmem:[#allocation7 + $0x10] sm:$0xff] %v147_v8  ;;  %v139_v10 = vadd.f32 %v175_v6, %v138_v9 }
  0xf1   :  { %v201_v11 = vpop.f32.mrf.mxu0 }
  0xf2   :  { %153 = vst [vmem:[#allocation7] sm:$0xff] %v139_v10  ;;  %v150_v12 = vadd.f32 %v201_v11, %v175_v6 }
  0xf3   :  { %v141_v13 = vpop.f32.mrf.mxu0 }
  0xf4   :  { %156 = vst [vmem:[#allocation7 + $0x18] sm:$0xff] %v150_v12  ;;  %v142_v14 = vadd.f32 %v175_v6, %v141_v13 }
  0xf6   :  { %154 = vst [vmem:[#allocation7 + $0x8] sm:$0xff] %v142_v14 }
  0xf7   :  { %266 = shalt.err (!%p263_p0)
}
  0xf8   :  { %s286_s2 = smov 128   ;;  %s287_s27 = smov 8  }
  0xf9   :  { %168 = dma.vmem_to_hbm [thread:$0]  %s163_s25, 512, %s323_s3, [#allocation4], %s286_s2, %s286_s2, %s287_s27  }
  0xfa   :  { %279 = dma.done.wait [#allocation4], 512  }
  0xfb   :  { %280 = vsyncadd [#allocation4], 4294966784 }
  0xfc   :  { %172 = vsyncpa [#allocation3], 1 }
  0xfd   :  { %173 = vsyncpa [#allocation6], 1 }
  0xfe   :  { %174 = vsyncpa [#allocation4], 1 }

</bundles_post_ra>
